<compile_context>
chip_gen: v5e
topology: v5e:2x2
jax: 0.10.0
libtpu: 0.0.40
codegen_flags: <defaults>
</compile_context>

<pallas_src>
from functools import partial

import jax
import jax.numpy as jnp
from jax import lax
from jax.experimental import pallas as pl
from jax.experimental.pallas import tpu as pltpu

LEAKY_SLOPE = 0.2


# ---------------------------------------------------------------------------
# Sizing helpers
# ---------------------------------------------------------------------------
def _vmem_limit_bytes():
    """Generation-aware VMEM budget: ~3/4 of physical, capped at 112 MiB.

    v5e/v6e (128 MiB physical) -> 96 MiB limit; v7x (64 MiB) -> 48 MiB limit.
    Falls back to a 48 MiB limit if the query is unavailable.
    """
    cap = 64 * 1024 * 1024
    try:
        cap = int(getattr(pltpu.get_tpu_info(), "vmem_capacity_bytes", cap))
    except Exception:
        pass
    if cap < 32 * 1024 * 1024:
        cap = 64 * 1024 * 1024
    return min(cap * 3 // 4, 112 * 1024 * 1024)


def _pick_t_hw(hw, c_in, c_out, in_bytes, out_bytes, vmem_limit):
    """Pick the HW (lane-axis) tile from a byte budget, not a fixed lane cap."""
    # Per-lane bytes of the conv-pass working set: double-buffered x block,
    # double-buffered out block, plus f32 temporaries headroom.
    per_lane = 2 * (c_in * in_bytes + c_out * out_bytes) + 4 * (c_in + c_out)
    t = (vmem_limit // 2) // max(per_lane, 1)
    t = (t // 128) * 128
    # TODO(synk): split C_in over an extra "arbitrary" grid axis when even a
    # 128-lane tile exceeds the budget (extremely wide channel counts).
    t = max(t, 128)
    if hw <= t:
        return hw           # single block spanning HW (full-extent dim is always legal)
    return t                # multiple of 128; ragged tail handled by masking


# ---------------------------------------------------------------------------
# Kernels
# ---------------------------------------------------------------------------
def _conv1x1_kernel(x_ref, w_ref, b_ref, o_ref, *, apply_act):
    # x_ref: (C_in, t_hw) native dtype, w_ref: (C_out, C_in) f32, b_ref: (C_out, 1) f32.
    y = jnp.dot(w_ref[...], x_ref[...], preferred_element_type=jnp.float32)
    y = y + b_ref[...]
    if apply_act:
        y = jnp.where(y > 0, y, LEAKY_SLOPE * y)
    o_ref[...] = y.astype(o_ref.dtype)


def _xstats_kernel(x_ref, gram_ref, sum_ref, *, hw, t_hw):
    # Accumulate Gram(x) = x x^T (C_in, C_in) and column-sum (C_in, 1) over the
    # t (HW-tile) grid axis directly in the resident output blocks.
    t = pl.program_id(1)

    @pl.when(t == 0)
    def _():
        gram_ref[...] = jnp.zeros_like(gram_ref)
        sum_ref[...] = jnp.zeros_like(sum_ref)

    x = x_ref[...].astype(jnp.float32)
    if hw % t_hw != 0:  # mask the ragged final tile (stale VMEM past the edge)
        col = t * t_hw + lax.broadcasted_iota(jnp.int32, x.shape, 1)
        x = jnp.where(col < hw, x, 0.0)
    gram_ref[...] += lax.dot_general(
        x, x, (((1,), (1,)), ((), ())), preferred_element_type=jnp.float32)
    sum_ref[...] += jnp.sum(x, axis=-1, keepdims=True)


def _ystats_kernel(y_ref, sum_ref, sq_ref, *, hw, t_hw):
    # Per-channel sum / sum-of-squares of y, accumulated over the t axis (VPU only).
    t = pl.program_id(1)

    @pl.when(t == 0)
    def _():
        sum_ref[...] = jnp.zeros_like(sum_ref)
        sq_ref[...] = jnp.zeros_like(sq_ref)

    y = y_ref[...].astype(jnp.float32)
    if hw % t_hw != 0:
        col = t * t_hw + lax.broadcasted_iota(jnp.int32, y.shape, 1)
        y = jnp.where(col < hw, y, 0.0)
    sum_ref[...] += jnp.sum(y, axis=-1, keepdims=True)
    sq_ref[...] += jnp.sum(y * y, axis=-1, keepdims=True)


def _scale_shift_act_kernel(y_ref, scale_ref, shift_ref, o_ref, *, apply_act):
    y = y_ref[...].astype(jnp.float32) * scale_ref[...] + shift_ref[...]
    if apply_act:
        y = jnp.where(y > 0, y, LEAKY_SLOPE * y)
    o_ref[...] = y.astype(o_ref.dtype)


# ---------------------------------------------------------------------------
# Wrapper
# ---------------------------------------------------------------------------
def conv2d_forward(x_nchw, weight, bias, *, batch_norm, gamma=None, beta=None,
                   activation=True, eps=1e-6, t_hw_override=None):
    """Forward pass of the `conv2d` module (kernel_size=1, stride=1)."""
    N, C_in, H, W = x_nchw.shape
    C_out, _, kh, kw = weight.shape
    if kh != 1 or kw != 1:
        raise NotImplementedError(
            "only the kernel_size=1, stride=1, padding=0 path is implemented")

    HW = H * W
    M = N * HW
    out_dtype = x_nchw.dtype

    vmem_limit = _vmem_limit_bytes()
    in_bytes = jnp.dtype(x_nchw.dtype).itemsize
    out_bytes = jnp.dtype(out_dtype).itemsize
    t_hw = t_hw_override if t_hw_override else _pick_t_hw(
        HW, C_in, C_out, in_bytes, out_bytes, vmem_limit)
    t_hw = min(t_hw, HW)          # (override, if used, must be a multiple of 128 or >= HW)
    n_t = pl.cdiv(HW, t_hw)
    grid = (N, n_t)

    cparams_par = pltpu.CompilerParams(
        dimension_semantics=("parallel", "parallel"),   # megacore-splittable on v7x
        vmem_limit_bytes=vmem_limit)
    cparams_acc = pltpu.CompilerParams(
        dimension_semantics=("parallel", "arbitrary"),  # t is an accumulation axis
        vmem_limit_bytes=vmem_limit)

    # NCHW kept end-to-end: free, contiguous reshape; HW lives on the 128-lane axis.
    x3 = x_nchw.reshape(N, C_in, HW)
    w2 = weight[:, :, 0, 0].astype(jnp.float32)   # (C_out, C_in)
    b2 = bias.astype(jnp.float32)                 # (C_out,)

    x_spec = pl.BlockSpec((None, C_in, t_hw), lambda n, t: (n, 0, t))
    y_spec = pl.BlockSpec((None, C_out, t_hw), lambda n, t: (n, 0, t))

    def conv_call(w_mat, b_vec, apply_act, out_dt):
        return pl.pallas_call(
            partial(_conv1x1_kernel, apply_act=apply_act),
            out_shape=jax.ShapeDtypeStruct((N, C_out, HW), out_dt),
            grid_spec=pltpu.PrefetchScalarGridSpec(
                num_scalar_prefetch=0, grid=grid,
                in_specs=[
                    x_spec,
                    pl.BlockSpec((C_out, C_in), lambda n, t: (0, 0)),
                    pl.BlockSpec((C_out, 1), lambda n, t: (0, 0)),
                ],
                out_specs=pl.BlockSpec((None, C_out, t_hw), lambda n, t: (n, 0, t)),
            ),
            compiler_params=cparams_par,
        )(x3, w_mat, b_vec.reshape(C_out, 1))

    # ---------------- no BatchNorm: single fused pass ----------------
    if not batch_norm:
        return conv_call(w2, b2, activation, out_dtype).reshape(N, C_out, H, W)

    # ---------------- BatchNorm: choose the cheaper statistics strategy -----
    #   analytic Gram-of-x: ~2*C_in + C_out HBM bytes/pixel, C_in^2*HW MXU flops.
    #   materialize-y:      ~C_in + 4*C_out bytes/pixel, VPU-only stats.
    is_v5e = False
    try:
        kind = jax.devices()[0].device_kind.lower()
        is_v5e = ("v5 lite" in kind) or ("v5e" in kind)
    except Exception:
        pass
    use_y_path = (C_in >= 128 and C_in > 3 * C_out) or (is_v5e and C_in >= 512)

    if not use_y_path:
        # Analytic path: tiny stats pass over x; BN stats of y = Wx + b follow
        # analytically, so y never touches HBM.
        gram, xsum = pl.pallas_call(
            partial(_xstats_kernel, hw=HW, t_hw=t_hw),
            out_shape=(
                jax.ShapeDtypeStruct((N, C_in, C_in), jnp.float32),
                jax.ShapeDtypeStruct((N, C_in, 1), jnp.float32),
            ),
            grid_spec=pltpu.PrefetchScalarGridSpec(
                num_scalar_prefetch=0, grid=grid,
                in_specs=[x_spec],
                out_specs=[
                    pl.BlockSpec((None, C_in, C_in), lambda n, t: (n, 0, 0)),
                    pl.BlockSpec((None, C_in, 1), lambda n, t: (n, 0, 0)),
                ],
            ),
            compiler_params=cparams_acc,
        )(x3)
        gram = jnp.sum(gram, axis=0)                       # (C_in, C_in)
        xsum = jnp.sum(xsum, axis=0).reshape(C_in)         # (C_in,)
        mean_x = xsum / M
        wmx = w2 @ mean_x
        mu_y = wmx + b2
        second = jnp.einsum('ci,ij,cj->c', w2, gram / M, w2)
        var_y = jnp.maximum(second - jnp.square(wmx), 0.0)  # clamp cancellation
        scale = gamma.astype(jnp.float32) * lax.rsqrt(var_y + eps)
        shift = beta.astype(jnp.float32) - mu_y * scale
        w_eff = scale[:, None] * w2
        b_eff = scale * b2 + shift
        y3 = conv_call(w_eff, b_eff, activation, out_dtype)
        return y3.reshape(N, C_out, H, W)

    # Materialize-y path: unnormalized y (f32), VPU stats, then scale/shift+act.
    y_f32 = conv_call(w2, b2, False, jnp.float32)
    ysum, ysq = pl.pallas_call(
        partial(_ystats_kernel, hw=HW, t_hw=t_hw),
        out_shape=(
            jax.ShapeDtypeStruct((N, C_out, 1), jnp.float32),
            jax.ShapeDtypeStruct((N, C_out, 1), jnp.float32),
        ),
        grid_spec=pltpu.PrefetchScalarGridSpec(
            num_scalar_prefetch=0, grid=grid,
            in_specs=[y_spec],
            out_specs=[
                pl.BlockSpec((None, C_out, 1), lambda n, t: (n, 0, 0)),
                pl.BlockSpec((None, C_out, 1), lambda n, t: (n, 0, 0)),
            ],
        ),
        compiler_params=cparams_acc,
    )(y_f32)
    ysum = jnp.sum(ysum, axis=0).reshape(C_out)
    ysq = jnp.sum(ysq, axis=0).reshape(C_out)
    mu_y = ysum / M
    var_y = jnp.maximum(ysq / M - jnp.square(mu_y), 0.0)
    scale = gamma.astype(jnp.float32) * lax.rsqrt(var_y + eps)
    shift = beta.astype(jnp.float32) - mu_y * scale
    out3 = pl.pallas_call(
        partial(_scale_shift_act_kernel, apply_act=activation),
        out_shape=jax.ShapeDtypeStruct((N, C_out, HW), out_dtype),
        grid_spec=pltpu.PrefetchScalarGridSpec(
            num_scalar_prefetch=0, grid=grid,
            in_specs=[
                y_spec,
                pl.BlockSpec((C_out, 1), lambda n, t: (0, 0)),
                pl.BlockSpec((C_out, 1), lambda n, t: (0, 0)),
            ],
            out_specs=pl.BlockSpec((None, C_out, t_hw), lambda n, t: (n, 0, t)),
        ),
        compiler_params=cparams_par,
    )(y_f32, scale.reshape(C_out, 1), shift.reshape(C_out, 1))
    return out3.reshape(N, C_out, H, W)


# ---------------------------------------------------------------------------
# Pure-JAX reference (for correctness checks)
# ---------------------------------------------------------------------------
def conv2d_reference(x_nchw, weight, bias, *, batch_norm, gamma=None, beta=None,
                     activation=True, eps=1e-6):
    N, C_in, H, W = x_nchw.shape
    C_out = weight.shape[0]
    x2 = jnp.transpose(x_nchw.astype(jnp.float32), (0, 2, 3, 1)).reshape(-1, C_in)
    y = x2 @ weight[:, :, 0, 0].astype(jnp.float32).T + bias.astype(jnp.float32)[None, :]
    if batch_norm:
        mean = jnp.mean(y, axis=0)
        var = jnp.mean((y - mean) ** 2, axis=0)
        y = (y - mean) / jnp.sqrt(var + eps) * gamma.astype(jnp.float32) \
            + beta.astype(jnp.float32)
    if activation:
        y = jnp.where(y > 0, y, LEAKY_SLOPE * y)
    return y.reshape(N, H, W, C_out).transpose(0, 3, 1, 2)


# ---------------------------------------------------------------------------
# Demo / self-test
# ---------------------------------------------------------------------------
def _make_params(k_param, k_gamma, k_beta, c_in, c_out):
    k_w, k_b = jax.random.split(k_param)
    bound = 1.0 / float(c_in) ** 0.5
    weight = jax.random.uniform(k_w, (c_out, c_in, 1, 1), minval=-bound,
                                maxval=bound, dtype=jnp.float32)
    bias = jax.random.uniform(k_b, (c_out,), minval=-bound, maxval=bound,
                              dtype=jnp.float32)
    gamma = jax.random.uniform(k_gamma, (c_out,), minval=0.5, maxval=1.5,
                               dtype=jnp.float32)
    beta = jax.random.uniform(k_beta, (c_out,), minval=-0.5, maxval=0.5,
                              dtype=jnp.float32)
    return weight, bias, gamma, beta


if __name__ == "__main__":
    root = jax.random.PRNGKey(0)
    keys = jax.random.split(root, 8)

    def check(idx, *, N, C_in, C_out, H, W, batch_norm, activation=True,
              dtype=jnp.float32, t_hw_override=None, atol=2e-4, rtol=2e-3):
        kx, kp, kg, kb = jax.random.split(keys[idx], 4)
        weight, bias, gamma, beta = _make_params(kp, kg, kb, C_in, C_out)
        x = jax.random.normal(kx, (N, C_in, H, W), dtype=jnp.float32).astype(dtype)
        out = conv2d_forward(x, weight, bias, batch_norm=batch_norm, gamma=gamma,
                             beta=beta, activation=activation,
                             t_hw_override=t_hw_override)
        jax.block_until_ready(out)
        ref = conv2d_reference(x, weight, bias, batch_norm=batch_norm, gamma=gamma,
                               beta=beta, activation=activation)
        assert out.shape == (N, C_out, H, W), f"config {idx}: shape"
        assert out.dtype == x.dtype, f"config {idx}: dtype"
        assert jnp.allclose(out.astype(jnp.float32), ref, atol=atol, rtol=rtol), \
            f"config {idx}: values"

    # 1) batchNorm=True (analytic-Gram path) + LeakyReLU, single HW tile.
    check(0, N=2, C_in=4, C_out=8, H=16, W=16, batch_norm=True)
    # 2) batchNorm=False: fused conv + bias + LeakyReLU.
    check(1, N=2, C_in=4, C_out=8, H=16, W=16, batch_norm=False)
    # 3) analytic path with a ragged final HW tile (exercises masked x-stats).
    check(2, N=2, C_in=4, C_out=8, H=17, W=17, batch_norm=True, t_hw_override=128)
    # 4) materialize-y path (C_in >> C_out) with a ragged final tile.
    check(3, N=1, C_in=256, C_out=32, H=17, W=17, batch_norm=True, t_hw_override=128)
    # 5) bf16 in / bf16 out (analytic path; f32 accumulation inside the kernels).
    check(4, N=2, C_in=8, C_out=16, H=16, W=16, batch_norm=True,
          dtype=jnp.bfloat16, atol=3e-2, rtol=3e-2)

    print("KERNEL_OK")
</pallas_src>

<mosaic_0001>
module attributes {stable_mosaic.version = 11 : i64} {
  func.func @_xstats_kernel(%arg0: i32, %arg1: i32, %arg2: memref<1x4x256xf32, #tpu.memory_space<vmem>>, %arg3: memref<1x4x4xf32, #tpu.memory_space<vmem>>, %arg4: memref<1x4x1xf32, #tpu.memory_space<vmem>>) attributes {dimension_semantics = [#tpu.dimension_semantics<parallel>, #tpu.dimension_semantics<arbitrary>], iteration_bounds = array<i64: 2, 1>, scalar_prefetch = 0 : i64, scratch_operands = 0 : i64, tpu.core_type = #tpu.core_type<tc>, window_params = [{transform_indices = @transform_0, window_bounds = array<i64: 1, 4, 256>}, {transform_indices = @transform_1, window_bounds = array<i64: 1, 4, 4>}, {transform_indices = @transform_2, window_bounds = array<i64: 1, 4, 1>}]} {
    %c0_i32 = arith.constant 0 : i32
    %0 = arith.cmpi eq, %arg1, %c0_i32 : i32
    %1 = arith.extui %0 : i1 to i32
    %c0_i32_0 = arith.constant 0 : i32
    %2 = arith.cmpi ne, %1, %c0_i32_0 : i32
    scf.if %2 {
      %cst_16 = arith.constant 0.000000e+00 : f32
      %20 = vector.broadcast %cst_16 : f32 to vector<4x4xf32>
      %c0_17 = arith.constant 0 : index
      %c0_18 = arith.constant 0 : index
      %c0_19 = arith.constant 0 : index
      %21 = vector.load %arg3[%c0_17, %c0_18, %c0_19] : memref<1x4x4xf32, #tpu.memory_space<vmem>>, vector<1x4x4xf32>
      %22 = vector.shape_cast %21 : vector<1x4x4xf32> to vector<4x4xf32>
      %23 = vector.shape_cast %20 : vector<4x4xf32> to vector<1x4x4xf32>
      tpu.vector_store %arg3[%c0_17, %c0_18, %c0_19], %23 {strides = array<i32>} : memref<1x4x4xf32, #tpu.memory_space<vmem>>, vector<1x4x4xf32>,
      %cst_20 = arith.constant 0.000000e+00 : f32
      %24 = vector.broadcast %cst_20 : f32 to vector<4x1xf32>
      %c0_21 = arith.constant 0 : index
      %c0_22 = arith.constant 0 : index
      %c0_23 = arith.constant 0 : index
      %25 = vector.load %arg4[%c0_21, %c0_22, %c0_23] : memref<1x4x1xf32, #tpu.memory_space<vmem>>, vector<1x4x1xf32>
      %26 = vector.shape_cast %25 : vector<1x4x1xf32> to vector<4x1xf32>
      %27 = vector.shape_cast %24 : vector<4x1xf32> to vector<1x4x1xf32>
      tpu.vector_store %arg4[%c0_21, %c0_22, %c0_23], %27 {strides = array<i32>} : memref<1x4x1xf32, #tpu.memory_space<vmem>>, vector<1x4x1xf32>,
    } else {
    }
    %c0 = arith.constant 0 : index
    %c0_1 = arith.constant 0 : index
    %c0_2 = arith.constant 0 : index
    %3 = vector.load %arg2[%c0, %c0_1, %c0_2] : memref<1x4x256xf32, #tpu.memory_space<vmem>>, vector<1x4x256xf32>
    %4 = vector.shape_cast %3 : vector<1x4x256xf32> to vector<4x256xf32>
    %c0_3 = arith.constant 0 : index
    %c0_4 = arith.constant 0 : index
    %c0_5 = arith.constant 0 : index
    %5 = vector.load %arg3[%c0_3, %c0_4, %c0_5] : memref<1x4x4xf32, #tpu.memory_space<vmem>>, vector<1x4x4xf32>
    %6 = vector.shape_cast %5 : vector<1x4x4xf32> to vector<4x4xf32>
    %cst = arith.constant dense<0.000000e+00> : vector<4x4xf32>
    %7 = tpu.matmul %4, %4, %cst {dimension_numbers = #tpu.dot_dimension_numbers<[1], [1], [0], [0], [0, 0, 1, 0], [], []>} : vector<4x256xf32>, vector<4x256xf32>, vector<4x4xf32> -> vector<4x4xf32>
    %8 = arith.addf %6, %7 : vector<4x4xf32>
    %c0_6 = arith.constant 0 : index
    %c0_7 = arith.constant 0 : index
    %c0_8 = arith.constant 0 : index
    %9 = vector.load %arg3[%c0_6, %c0_7, %c0_8] : memref<1x4x4xf32, #tpu.memory_space<vmem>>, vector<1x4x4xf32>
    %10 = vector.shape_cast %9 : vector<1x4x4xf32> to vector<4x4xf32>
    %11 = vector.shape_cast %8 : vector<4x4xf32> to vector<1x4x4xf32>
    tpu.vector_store %arg3[%c0_6, %c0_7, %c0_8], %11 {strides = array<i32>} : memref<1x4x4xf32, #tpu.memory_space<vmem>>, vector<1x4x4xf32>,
    %c0_9 = arith.constant 0 : index
    %c0_10 = arith.constant 0 : index
    %c0_11 = arith.constant 0 : index
    %12 = vector.load %arg4[%c0_9, %c0_10, %c0_11] : memref<1x4x1xf32, #tpu.memory_space<vmem>>, vector<1x4x1xf32>
    %13 = vector.shape_cast %12 : vector<1x4x1xf32> to vector<4x1xf32>
    %cst_12 = arith.constant dense<0.000000e+00> : vector<4xf32>
    %14 = vector.multi_reduction <add>, %4, %cst_12 [1] : vector<4x256xf32> to vector<4xf32>
    %15 = vector.shape_cast %14 : vector<4xf32> to vector<4x1xf32>
    %16 = arith.addf %13, %15 : vector<4x1xf32>
    %c0_13 = arith.constant 0 : index
    %c0_14 = arith.constant 0 : index
    %c0_15 = arith.constant 0 : index
    %17 = vector.load %arg4[%c0_13, %c0_14, %c0_15] : memref<1x4x1xf32, #tpu.memory_space<vmem>>, vector<1x4x1xf32>
    %18 = vector.shape_cast %17 : vector<1x4x1xf32> to vector<4x1xf32>
    %19 = vector.shape_cast %16 : vector<4x1xf32> to vector<1x4x1xf32>
    tpu.vector_store %arg4[%c0_13, %c0_14, %c0_15], %19 {strides = array<i32>} : memref<1x4x1xf32, #tpu.memory_space<vmem>>, vector<1x4x1xf32>,
    return
  }
  func.func @transform_0(%arg0: i32, %arg1: i32) -> (i32, i32, i32) {
    %c0_i32 = arith.constant 0 : i32
    %c0_i32_0 = arith.constant 0 : i32
    return %arg0, %c0_i32, %arg1 : i32, i32, i32
  }
  func.func @transform_1(%arg0: i32, %arg1: i32) -> (i32, i32, i32) {
    %c0_i32 = arith.constant 0 : i32
    %c0_i32_0 = arith.constant 0 : i32
    %c0_i32_1 = arith.constant 0 : i32
    return %arg0, %c0_i32, %c0_i32_0 : i32, i32, i32
  }
  func.func @transform_2(%arg0: i32, %arg1: i32) -> (i32, i32, i32) {
    %c0_i32 = arith.constant 0 : i32
    %c0_i32_0 = arith.constant 0 : i32
    %c0_i32_1 = arith.constant 0 : i32
    return %arg0, %c0_i32, %c0_i32_0 : i32, i32, i32
  }
}

</mosaic_0001>

<bundles_post_ra>
// kernel: tpu_custom_call.1
= control target key start
LH: loop header
LB: loop body
LE: loop exit
PB: predicated region body
PF: predicated region fallthrough
CT: control target
= control target key end

     0   :  { %8 = vsyncpa [#allocation3], 0  ;;  %s734_s0 = inlined_call_operand.hbm [shape: f32[2,4,256], index: 0, kind: input, shape index: {}]   ;;  %s735_s1 = inlined_call_operand.hbm [shape: f32[2,4,4], index: 1, kind: output, shape index: {0}]   ;;  %s736_s2 = inlined_call_operand.vmem [shape: f32[2,4,1], index: 2, kind: output, shape index: {1}]  }
   0x1   :  { %10 = vsyncpa [#allocation3 + $0x1], 0 }
   0x2   :  { %11 = vsyncpa [#allocation4], 0 }
   0x3   :  { %13 = vsyncpa [#allocation4 + $0x1], 0  ;;  %s606_s9 = smov 0   ;;  %s608_s10 = smov 0  }
   0x4   :  { %s610_s11 = smov 0   ;;  %s612_s12 = smov 0  }
   0x5   :  { %s614_s13 = smov 0   ;;  %s616_s14 = smov 0  }
   0x6 LB: > { %s397_s15 = sadd.s32 4294967295, %s588_s14   ;;  %s398_s16 = sadd.s32 4294967294, %s588_s14   ;;  %s588_s14 = sphi %s616_s14, %s19_s14   ;;  %s584_s13 = sphi %s614_s13, %s745_s13   ;;  %s580_s12 = sphi %s612_s12, %s744_s12   ;;  %s576_s11 = sphi %s610_s11, %s743_s11   ;;  %s572_s10 = sphi %s608_s10, %s742_s10   ;;  %s568_s9 = sphi %s606_s9, %s741_s9  }
   0x7   : > { %s31_s17 = sadd.s32 1, %s584_s13  ;;  %s40_s18 = sadd.s32 1, %s576_s11 }
   0x8   : > { %p33_p0 = scmp.ge.s32.totalorder %s31_s17, 2  ;;  %p47_p1 = scmp.ne.s32.totalorder %s576_s11, %s572_s10 }
   0x9   : > { %p48_p2 = scmp.eq.s32.totalorder %s588_s14, 0  ;;  %p53_p3 = scmp.ne.s32.totalorder %s572_s10, %s568_s9 }
   0xa   : > { %s747_s17 = smov (%p33_p0, %s31_s17), 0  ;;  %p54_p5 = scmp.eq.s32.totalorder %s397_s15, 0 }
   0xb   : > { %p647_p4 = por %p48_p2, %p47_p1  ;;  %s35_s20 = ssub.s32 %s584_s13, %s747_s17 }
   0xc   : > { %p77_p6 = scmp.eq.s32.totalorder %s397_s15, 1  ;;  %p38_p7 = scmp.eq.s32.totalorder %s35_s20, 0 }
   0xd   : > { %p653_p8 = por %p54_p5, %p53_p3  ;;  %p83_p10 = scmp.eq.s32.totalorder %s398_s16, 1 }
   0xe   : > { %p657_p9 = por %p77_p6, %p47_p1  ;;  %p400_p12 = scmp.ge.s32.totalorder %s588_s14, 2 }
   0xf   : > { %s662_s23 = scalar_select %p38_p7, %s576_s11, %s40_s18  }
  0x10   : > { %p664_p11 = por %p83_p10, %p53_p3  ;;  %p425_p13 = scmp.lt.s32.totalorder %s588_s14, 2 }
  0x11   : > { %s129_s25 = sand.u32 1, %s576_s11   ;;  %s412_s27 = sshll.u32 %s584_s13, 3 }
  0x12   : > { %s401_s26 = sshll.u32 %s129_s25, 3  ;;  %s140_s30 = scalar_lea.hbm %s734_s0, %s412_s27 }
  0x13   : > { %s133_s3 = scalar_lea.vmem [#allocation2], %s401_s26  ;;  %s142_s5 = sshll.u32 %s140_s30, 4  ;;  %s143_s5 = int_to_ptr.hbm [resolvable:$true] %s142_s5 }
  0x14   : > { %s144_s4 = sshll.u32 %s133_s3, 4  ;;  %p418_p0 = pnand %p425_p13, %p647_p4  ;;  %s145_s4 = int_to_ptr.vmem [resolvable:$true] %s144_s4 }
  0x15   : > { %p404_p1 = scmp.ge.s32.totalorder %s588_s14, 1  ;;  %p149_p2 = scmp.lt.s32.totalorder %s588_s14, 3 }
  0x16   : > { %s130_s6 = scalar_lea.sflag [#allocation3], %s129_s25 }
  0x17   : > { %420 = dma.hbm_to_vmem [thread:$0]  (!%p418_p0), %s143_s5, 128, %s145_s4, %s130_s6  }
  0x18   : > { %p150_p3 = pnand %p404_p1, %p149_p2 }
  0x19   : > { %s680_s7 = sand.u32 (!%p150_p3), 1, %s572_s10  }
  0x1a   : > { %153 = sbr.rel (%p150_p3) target bundleno = 185 (0xb9), region = 24  ;;  %s405_s8 = sshll.u32 (!%p150_p3), %s680_s7, 3 }
  0x1b   : > { %s156_s15 = scalar_lea.sflag (!%p150_p3), [#allocation3], %s680_s7  ;;  %s159_s16 = scalar_lea.vmem (!%p150_p3), [#allocation2], %s405_s8 }
  0x1f   : > { %559 = dma.done.wait (%p653_p8), %s156_s15, 128  }
  0x20   : > { %561 = vsyncadd (%p653_p8), %s156_s15, 4294967168  ;;  %v198_v0 = vld [vmem:[%s159_s16] sm:$0xff]  ;;  %vm260_vm0 = vcmask 1043456   ;;  %p186_p4 = scmp.lt.s32.totalorder %s580_s12, 1  ;;  %s406_s19 = sshll.u32 %s680_s7, 2  ;;  %vm194_vm1 = vcmask 27648  }
  0x21   : > { %201 = vst [vmem:[#allocation1] ss:$2 sm:$0xff] %v198_v0  ;;  %s178_s27 = scalar_lea.vmem [#allocation5], %s406_s19  ;;  %v590_v10 = vmov 0.0   ;;  %vm196_vm2 = vcmask 3072   ;;  %s409_s28 = sshll.u32 %s580_s12, 2 }
  0x22   : > { %s187_s18 = scalar_select %p186_p4, %s580_s12, 1  ;;  %195 = vst.msk [vmem:[%s178_s27] sm:$0xf] %vm194_vm1, %v590_v10 }
  0x23   : > { %s284_s3 = scalar_lea.hbm %s735_s1, %s409_s28  ;;  %s286_s4 = sshll.u32 %s178_s27, 4  ;;  %s287_s4 = int_to_ptr.vmem [resolvable:$true] %s286_s4 }
  0x24   : > { %s407_s20 = sshll.u32 %s187_s18, 2  ;;  %s288_s5 = sshll.u32 %s284_s3, 4  ;;  %s289_s5 = int_to_ptr.hbm [resolvable:$true] %s288_s5 }
  0x25   : > { %s189_s26 = scalar_lea.vmem %s736_s2, %s407_s20  ;;  %s270_s12 = scalar_lea.sflag [#allocation4], %s680_s7 }
  0x26   : > { %197 = vst.msk [vmem:[%s189_s26] sm:$0xf] %vm196_vm2, %v590_v10  ;;  %s520_s6 = sshra.s32 %s289_s5, 4  ;;  %s526_s18 = scalar_lea.hbm %s735_s1, 8  ;;  %s521_s6 = int_to_ptr.hbm [resolvable:$true] %s520_s6 }
  0x27   : > { %s522_s8 = scalar_lea.hbm %s521_s6, 4  ;;  %p527_p8 = scmp.lt.s32.totalorder %s521_s6, %s735_s1 }
  0x28   : > { %v202_v1 = vld.sshfl [vmem:[#allocation1] sm:$0xff pattern:$0x75316420]  ;;  %v203_v2 = vld.sshfl [vmem:[#allocation1 + $0x8] sm:$0xff pattern:$0x75316420]  ;;  %p523_p5 = scmp.ne.s32.totalorder %s521_s6, %s522_s8  ;;  %p528_p10 = scmp.lt.s32.totalorder %s526_s18, %s522_s8 }
  0x29   : > { %206 = vst [vmem:[#allocation1] ss:$2 sm:$0xff] %v198_v0  ;;  %v199_v15 = vld [vmem:[%s178_s27] sm:$0xf] }
  0x2a   : > { %p524_p6 = pnand %p523_p5, %p657_p9  ;;  %p529_p13 = por %p528_p10, %p527_p8 }
  0x2c   : > { %p525_p7 = pneg %p524_p6 }
  0x2d   : > { %v254_v11 = vld [vmem:[%s189_s26] sm:$0xf] }
  0x2e   : > { %p530_p0 = pnand %p529_p13, %p525_p7 }
  0x30   : > { %v207_v3 = vld.sshfl [vmem:[#allocation1] sm:$0xff pattern:$0x75316420]  ;;  %v208_v4 = vld.sshfl [vmem:[#allocation1 + $0x8] sm:$0xff pattern:$0x75316420] }
  0x31   : > { %226 = vmatpush.xpose.msra.mxu0 %v207_v3  ;;  %246 = vmatpush.xpose.msra.mxu1 %v208_v4  ;;  %255 = vst [vmem:[#allocation1] ss:$2 sm:$0xff] %v198_v0 }
  0x34   : > { %227 = vmatmul.f32.vlgmr.msra.gmra.mxu0 %v202_v1  ;;  %247 = vmatmul.f32.vlgmr.msra.gmra.mxu1 %v203_v2 }
  0x38   : > { %v256_v5 = vld.sshfl [vmem:[#allocation1] sm:$0xff pattern:$0x75316420]  ;;  %v257_v6 = vld.sshfl [vmem:[#allocation1 + $0x8] sm:$0xff pattern:$0x75316420] }
  0x39   : > { %v261_v7 = vsel %vm260_vm0, %v256_v5, 0.0  ;;  %v262_v8 = vsel %vm260_vm0, %v257_v6, 0.0 }
  0x3a   : > { %v263_v9 = vadd.f32 %v262_v8, %v261_v7 }
  0x3c   : > { %264 = vadd.xlane.f32.xlu0 %v263_v9 }
  0xaf   : > { %v265_v12 = vpop.xlane.xlu0 %264 }
  0xb0   : > { %v266_v13 = vadd.f32 %v265_v12, %v254_v11 }
  0xb1   : > { %v228_v14 = vpop.f32.mrf.mxu0  ;;  %v248_v16 = vpop.f32.mrf.mxu1 }
  0xb2   : > { %v249_v17 = vadd.f32 %v248_v16, %v228_v14  ;;  %268 = vst.msk [vmem:[%s189_s26] sm:$0xf] %vm196_vm2, %v266_v13 }
  0xb4   : > { %v251_v18 = vadd.f32 %v249_v17, %v199_v15 }
  0xb6   : > { %253 = vst.msk [vmem:[%s178_s27] sm:$0xf] %vm194_vm1, %v251_v18 }
  0xb7   : > { %533 = shalt.err (!%p530_p0)
}
  0xb8   : > { %415 = dma.vmem_to_hbm [thread:$0]  (%p657_p9), %s287_s4, 64, %s289_s5, %s270_s12  }
  0xb9 PF: > { %s303_s7 = sand.u32 1, %s568_s9   ;;  %p422_p1 = pnand %p400_p12, %p664_p11 }
  0xba   : > { %s304_s21 = scalar_lea.sflag [#allocation4], %s303_s7 }
  0xbb   : > { %p423_p2 = pneg %p422_p1 }
  0xbd   : > { %563 = dma.done.wait (%p423_p2), %s304_s21, 64  }
  0xbe   : > { %565 = vsyncadd (%p423_p2), %s304_s21, 4294967232  ;;  %s19_s14 = sadd.s32 1, %s588_s14   ;;  %s741_s9 = smov %s572_s10 }
  0xbf   : > { %p16_p3 = scmp.ge.s32.totalorder %s19_s14, 4   ;;  %s742_s10 = smov %s576_s11 }
  0xc0   : > { %s743_s11 = smov %s662_s23  ;;  %s744_s12 = smov %s584_s13 }
  0xc1   : > { %s745_s13 = smov %s747_s17  ;;  %18 = sbr.rel (!%p16_p3) target bundleno = 6 (0x6), region = 85 }
  0xc6   :  { %317 = vsyncpa [#allocation3], 1 }
  0xc7   :  { %319 = vsyncpa [#allocation3 + $0x1], 1 }
  0xc8   :  { %320 = vsyncpa [#allocation4], 1 }
  0xc9   :  { %322 = vsyncpa [#allocation4 + $0x1], 1 }

</bundles_post_ra>
